<compile_context>
chip_gen: v5e
topology: v5e:2x2
jax: 0.10.0
libtpu: 0.0.40
codegen_flags: <defaults>
</compile_context>

<pallas_src>
import functools

import jax
import jax.numpy as jnp
from jax.experimental import pallas as pl
from jax.experimental.pallas import tpu as pltpu


def _distill_kl_kernel(ys_ref, yt_ref, out_ref, *, inv_t, tile_n, n_valid):
    # f32 math regardless of input dtype (v5e VPU/EUP have no bf16).
    s = ys_ref[...].astype(jnp.float32) * inv_t
    t = yt_ref[...].astype(jnp.float32) * inv_t

    # Student log-softmax pieces (per-row shift + logsumexp).
    s_shift = s - jnp.max(s, axis=-1, keepdims=True)
    s_lse = jnp.log(jnp.sum(jnp.exp(s_shift), axis=-1, keepdims=True))      # [tile, 1]

    # Teacher softmax pieces.
    t_shift = t - jnp.max(t, axis=-1, keepdims=True)
    t_exp = jnp.exp(t_shift)
    t_sum = jnp.sum(t_exp, axis=-1, keepdims=True)                          # [tile, 1]
    log_t_sum = jnp.log(t_sum)

    # Per-row KL, algebraically collapsed:
    #   sum_c p_t*(log p_t - log p_s)
    # = sum_c t_exp*(t_shift - s_shift) / t_sum + (s_lse - log t_sum)
    cross = jnp.sum(t_exp * (t_shift - s_shift), axis=-1, keepdims=True)    # [tile, 1]
    row_kl = cross * pl.reciprocal(t_sum, approx=False) + (s_lse - log_t_sum)

    # Ragged last tile: rows past n_valid hold undefined VMEM data (never read
    # from HBM); all their intermediates stay in those rows, so masking the
    # per-row result is exact.
    row0 = pl.program_id(0) * tile_n
    row_ids = row0 + jax.lax.broadcasted_iota(jnp.int32, (tile_n, 1), 0)    # [tile, 1]
    row_kl = jnp.where(row_ids < n_valid, row_kl, 0.0)

    # One partial sum per tile, broadcast across the 128-lane output block
    # (lane-dense, unmasked store); the wrapper reads lane 0 per tile.
    partial = jnp.sum(row_kl, axis=0, keepdims=True)                        # (1, 1)
    out_ref[...] = jnp.broadcast_to(partial, out_ref.shape)


def _choose_tile_n(n, c):
    """Batch-tile rows: big enough to amortize per-step overhead, small enough
    that f32 working tiles + double-buffered inputs fit v7x's 64 MiB VMEM."""
    if n <= 8:
        return n
    max_rows = max(8, (2 * 1024 * 1024) // (4 * c))   # ~2 MiB per f32 tile
    tile = min(n, max_rows, 1024)
    return max(8, (tile // 8) * 8)


def distill_kl(y_s, y_t, T):
    """DistillKL forward. y_s, y_t: [N, C] logits (f32 or bf16). Returns f32 loss."""
    assert y_s.shape == y_t.shape and y_s.ndim == 2
    N, C = y_s.shape
    itemsize = jnp.dtype(y_s.dtype).itemsize

    tile_n = _choose_tile_n(N, C)
    num_tiles = pl.cdiv(N, tile_n)

    kernel = functools.partial(
        _distill_kl_kernel, inv_t=1.0 / float(T), tile_n=tile_n, n_valid=N
    )

    cost = pl.CostEstimate(
        flops=int(10 * N * C),
        transcendentals=int(2 * N * C),
        bytes_accessed=int(2 * N * C * itemsize + num_tiles * 128 * 4),
    )

    partials = pl.pallas_call(
        kernel,
        out_shape=jax.ShapeDtypeStruct((1, 128 * num_tiles), jnp.float32),
        grid_spec=pltpu.PrefetchScalarGridSpec(
            num_scalar_prefetch=0,
            grid=(num_tiles,),
            in_specs=[
                pl.BlockSpec((tile_n, C), lambda i: (i, 0)),
                pl.BlockSpec((tile_n, C), lambda i: (i, 0)),
            ],
            out_specs=pl.BlockSpec((1, 128), lambda i: (0, i)),
        ),
        compiler_params=pltpu.CompilerParams(
            dimension_semantics=("parallel",),        # tiles independent -> megacore on v7x
            vmem_limit_bytes=40 * 1024 * 1024,        # above scoped default, below v7x 64 MiB
        ),
        cost_estimate=cost,
    )(y_s, y_t)

    # Lane 0 of each tile's 128-lane block holds that tile's partial KL sum.
    per_tile = partials.reshape(num_tiles, 128)[:, 0]
    scale = (float(T) * float(T)) / float(N)          # applied once, on original batch size
    return jnp.sum(per_tile) * scale


def _distill_kl_ref(y_s, y_t, T):
    """Pure-JAX reference for sanity check."""
    log_p_s = jax.nn.log_softmax(y_s / T, axis=1)
    p_t = jax.nn.softmax(y_t / T, axis=1)
    log_p_t = jax.nn.log_softmax(y_t / T, axis=1)
    return jnp.sum(p_t * (log_p_t - log_p_s)) * T**2 / y_s.shape[0]


if __name__ == "__main__":
    key = jax.random.PRNGKey(0)
    T = 4.0        # distillation temperature (module __init__ arg)

    # Main small case: batch=8, num_classes=32.
    k1, k2 = jax.random.split(key)
    N, C = 8, 32
    y_s = jax.random.normal(k1, (N, C), dtype=jnp.float32)
    y_t = jax.random.normal(k2, (N, C), dtype=jnp.float32)
    loss = jax.block_until_ready(distill_kl(y_s, y_t, T))
    ref = _distill_kl_ref(y_s, y_t, T)
    assert jnp.allclose(loss, ref, rtol=1e-5, atol=1e-5), (loss, ref)

    # Ragged case (batch not a multiple of the 8-row tile) exercises the
    # in-kernel row mask for the last partial tile.
    k3, k4 = jax.random.split(k2)
    N2, C2 = 12, 32
    y_s2 = jax.random.normal(k3, (N2, C2), dtype=jnp.float32)
    y_t2 = jax.random.normal(k4, (N2, C2), dtype=jnp.float32)
    loss2 = jax.block_until_ready(distill_kl(y_s2, y_t2, T))
    ref2 = _distill_kl_ref(y_s2, y_t2, T)
    assert jnp.allclose(loss2, ref2, rtol=1e-5, atol=1e-5), (loss2, ref2)

    print("KERNEL_OK")
</pallas_src>

<mosaic_0001>
module attributes {stable_mosaic.version = 11 : i64} {
  func.func @_distill_kl_kernel(%arg0: i32, %arg1: memref<8x32xf32, #tpu.memory_space<vmem>>, %arg2: memref<8x32xf32, #tpu.memory_space<vmem>>, %arg3: memref<1x128xf32, #tpu.memory_space<vmem>>) attributes {dimension_semantics = [#tpu.dimension_semantics<parallel>], iteration_bounds = array<i64: 1>, scalar_prefetch = 0 : i64, scratch_operands = 0 : i64, tpu.core_type = #tpu.core_type<tc>, window_params = [{transform_indices = @transform_0, window_bounds = array<i64: 8, 32>}, {transform_indices = @transform_1, window_bounds = array<i64: 8, 32>}, {transform_indices = @transform_2, window_bounds = array<i64: 1, 128>}]} {
    %c0 = arith.constant 0 : index
    %c0_0 = arith.constant 0 : index
    %0 = vector.load %arg1[%c0, %c0_0] : memref<8x32xf32, #tpu.memory_space<vmem>>, vector<8x32xf32>
    %cst = arith.constant 2.500000e-01 : f32
    %1 = vector.broadcast %cst : f32 to vector<8x32xf32>
    %2 = arith.mulf %0, %1 : vector<8x32xf32>
    %c0_1 = arith.constant 0 : index
    %c0_2 = arith.constant 0 : index
    %3 = vector.load %arg2[%c0_1, %c0_2] : memref<8x32xf32, #tpu.memory_space<vmem>>, vector<8x32xf32>
    %cst_3 = arith.constant 2.500000e-01 : f32
    %4 = vector.broadcast %cst_3 : f32 to vector<8x32xf32>
    %5 = arith.mulf %3, %4 : vector<8x32xf32>
    %cst_4 = arith.constant dense<0xFF800000> : vector<8xf32>
    %6 = vector.multi_reduction <maximumf>, %2, %cst_4 [1] : vector<8x32xf32> to vector<8xf32>
    %7 = vector.shape_cast %6 : vector<8xf32> to vector<8x1xf32>
    %8 = vector.broadcast %7 : vector<8x1xf32> to vector<8x32xf32>
    %9 = arith.subf %2, %8 : vector<8x32xf32>
    %10 = math.exp %9 : vector<8x32xf32>
    %cst_5 = arith.constant dense<0.000000e+00> : vector<8xf32>
    %11 = vector.multi_reduction <add>, %10, %cst_5 [1] : vector<8x32xf32> to vector<8xf32>
    %12 = vector.shape_cast %11 : vector<8xf32> to vector<8x1xf32>
    %13 = math.log %12 : vector<8x1xf32>
    %cst_6 = arith.constant dense<0xFF800000> : vector<8xf32>
    %14 = vector.multi_reduction <maximumf>, %5, %cst_6 [1] : vector<8x32xf32> to vector<8xf32>
    %15 = vector.shape_cast %14 : vector<8xf32> to vector<8x1xf32>
    %16 = vector.broadcast %15 : vector<8x1xf32> to vector<8x32xf32>
    %17 = arith.subf %5, %16 : vector<8x32xf32>
    %18 = math.exp %17 : vector<8x32xf32>
    %cst_7 = arith.constant dense<0.000000e+00> : vector<8xf32>
    %19 = vector.multi_reduction <add>, %18, %cst_7 [1] : vector<8x32xf32> to vector<8xf32>
    %20 = vector.shape_cast %19 : vector<8xf32> to vector<8x1xf32>
    %21 = math.log %20 : vector<8x1xf32>
    %22 = arith.subf %17, %9 : vector<8x32xf32>
    %23 = arith.mulf %18, %22 : vector<8x32xf32>
    %cst_8 = arith.constant dense<0.000000e+00> : vector<8xf32>
    %24 = vector.multi_reduction <add>, %23, %cst_8 [1] : vector<8x32xf32> to vector<8xf32>
    %25 = vector.shape_cast %24 : vector<8xf32> to vector<8x1xf32>
    %26 = tpu.reciprocal %20 : vector<8x1xf32> -> vector<8x1xf32>
    %27 = arith.mulf %25, %26 : vector<8x1xf32>
    %28 = arith.subf %13, %21 : vector<8x1xf32>
    %29 = arith.addf %27, %28 : vector<8x1xf32>
    %c8_i32 = arith.constant 8 : i32
    %30 = arith.muli %arg0, %c8_i32 : i32
    %31 = tpu.iota {dimensions = array<i32: 0>} : vector<8x1xi32>
    %32 = vector.broadcast %30 : i32 to vector<8x1xi32>
    %33 = arith.addi %32, %31 : vector<8x1xi32>
    %c8_i32_9 = arith.constant 8 : i32
    %34 = vector.broadcast %c8_i32_9 : i32 to vector<8x1xi32>
    %35 = arith.cmpi slt, %33, %34 : vector<8x1xi32>
    %cst_10 = arith.constant 0.000000e+00 : f32
    %36 = vector.broadcast %cst_10 : f32 to vector<8x1xf32>
    %37 = arith.select %35, %29, %36 : vector<8x1xi1>, vector<8x1xf32>
    %cst_11 = arith.constant dense<0.000000e+00> : vector<1xf32>
    %38 = vector.multi_reduction <add>, %37, %cst_11 [0] : vector<8x1xf32> to vector<1xf32>
    %39 = vector.shape_cast %38 : vector<1xf32> to vector<1x1xf32>
    %40 = vector.shape_cast %39 : vector<1x1xf32> to vector<1x1xf32>
    %41 = vector.broadcast %40 : vector<1x1xf32> to vector<1x128xf32>
    %c0_12 = arith.constant 0 : index
    %c0_13 = arith.constant 0 : index
    %42 = vector.load %arg3[%c0_12, %c0_13] : memref<1x128xf32, #tpu.memory_space<vmem>>, vector<1x128xf32>
    tpu.vector_store %arg3[%c0_12, %c0_13], %41 {strides = array<i32>} : memref<1x128xf32, #tpu.memory_space<vmem>>, vector<1x128xf32>,
    return
  }
  func.func @transform_0(%arg0: i32) -> (i32, i32) {
    %c0_i32 = arith.constant 0 : i32
    %c0_i32_0 = arith.constant 0 : i32
    return %arg0, %c0_i32 : i32, i32
  }
  func.func @transform_1(%arg0: i32) -> (i32, i32) {
    %c0_i32 = arith.constant 0 : i32
    %c0_i32_0 = arith.constant 0 : i32
    return %arg0, %c0_i32 : i32, i32
  }
  func.func @transform_2(%arg0: i32) -> (i32, i32) {
    %c0_i32 = arith.constant 0 : i32
    %c0_i32_0 = arith.constant 0 : i32
    return %c0_i32, %arg0 : i32, i32
  }
}

</mosaic_0001>

<bundles_post_ra>
// kernel: tpu_custom_call.1
= control target key start
LH: loop header
LB: loop body
LE: loop exit
PB: predicated region body
PF: predicated region fallthrough
CT: control target
= control target key end

     0   :  { %7 = vsyncpa [#allocation3], 0  ;;  %s244_s0 = inlined_call_operand.hbm [shape: f32[8,32], index: 0, kind: input, shape index: {}]   ;;  %s245_s1 = inlined_call_operand.hbm [shape: f32[8,32], index: 1, kind: input, shape index: {}]   ;;  %s246_s2 = inlined_call_operand.hbm [shape: f32[1,128], index: 2, kind: output, shape index: {}]  }
   0x1   :  { %8 = vsyncpa [#allocation6], 0 }
   0x2   :  { %9 = vsyncpa [#allocation4], 0  ;;  %s15_s11 = sshll.u32 %s244_s0, 4  ;;  %s212_s12 = smov [#allocation2]   ;;  %s16_s11 = int_to_ptr.hbm [resolvable:$true] %s15_s11 }
   0x3   :  { %s17_s13 = sshll.u32 %s212_s12, 4  ;;  %s26_s16 = sshll.u32 %s245_s1, 4  ;;  %s18_s13 = int_to_ptr.vmem [resolvable:$true] %s17_s13  ;;  %s27_s16 = int_to_ptr.hbm [resolvable:$true] %s26_s16 }
   0x4   :  { %20 = dma.hbm_to_vmem [thread:$0]  %s16_s11, 128, %s18_s13, [#allocation3]  }
   0x5   :  { %s213_s17 = smov [#allocation5]  }
   0x6   :  { %s28_s18 = sshll.u32 %s213_s17, 4  ;;  %s29_s18 = int_to_ptr.vmem [resolvable:$true] %s28_s18 }
   0x7   :  { %31 = dma.hbm_to_vmem [thread:$0]  %s27_s16, 128, %s29_s18, [#allocation6]  }
   0x8   :  { %206 = dma.done.wait [#allocation3], 128  }
   0x9   :  { %207 = vsyncadd [#allocation3], 4294967168 }
   0xa   :  { %208 = dma.done.wait [#allocation6], 128  }
   0xb   :  { %209 = vsyncadd [#allocation6], 4294967168  ;;  %v42_v0 = vld [vmem:[#allocation5] sm:$0xff]  ;;  %vm44_vm0 = vcmask 261120   ;;  %v40_v2 = vld [vmem:[#allocation2] sm:$0xff]  ;;  %s214_s0 = smov [#allocation7]  }
   0xc   :  { %v43_v1 = vmul.f32 0.25, %v42_v0  ;;  %v41_v4 = vmul.f32 0.25, %v40_v2  ;;  %s108_s1 = sshll.u32 %s214_s0, 4  ;;  %s110_s21 = sshll.u32 %s246_s2, 4  ;;  %s109_s1 = int_to_ptr.vmem [resolvable:$true] %s108_s1  ;;  %s111_s21 = int_to_ptr.hbm [resolvable:$true] %s110_s21 }
   0xe   :  { %v56_v3 = vsel %vm44_vm0, %v43_v1, -inf  ;;  %v45_v5 = vsel %vm44_vm0, %v41_v4, -inf }
   0xf   :  { %57 = vmax.xlane.f32.xlu0 %v56_v3 }
  0x17   :  { %46 = vmax.xlane.f32.xlu0 %v45_v5 }
  0x82   :  { %v58_v6 = vpop.xlane.xlu0 %57 }
  0x83   :  { %v59_v7 = vsub.f32 %v43_v1, %v58_v6 }
  0x85   :  { %v60_v8 = vmul.f32 1.442695, %v59_v7 }
  0x87   :  { %124 = vpow2.f32 %v60_v8 }
  0x8a   :  { %v47_v9 = vpop.xlane.xlu0 %46 }
  0x8b   :  { %v48_v10 = vsub.f32 %v41_v4, %v47_v9 }
  0x8d   :  { %v125_v11 = vpop.eup %124  ;;  %v49_v12 = vmul.f32 1.442695, %v48_v10  ;;  %v67_v13 = vsub.f32 %v59_v7, %v48_v10 }
  0x8e   :  { %v62_v14 = vsel %vm44_vm0, %v125_v11, 0.0 }
  0x8f   :  { %126 = vpow2.f32 %v49_v12  ;;  %63 = vadd.xlane.f32.xlu1 %v62_v14  ;;  %v68_v15 = vmul.f32 %v125_v11, %v67_v13 }
  0x91   :  { %v69_v16 = vsel %vm44_vm0, %v68_v15, 0.0 }
  0x92   :  { %70 = vadd.xlane.f32.xlu2 %v69_v16 }
  0x95   :  { %v127_v17 = vpop.eup %126 }
  0x96   :  { %v51_v18 = vsel %vm44_vm0, %v127_v17, 0.0 }
  0x97   :  { %52 = vadd.xlane.f32.xlu1 %v51_v18 }
 0x102   :  { %v64_v19 = vpop.xlane.xlu1 %63 }
 0x103   :  { %128 = vrcp.f32 %v64_v19  ;;  %v83_v24 = vand.u32 2147483648, %v64_v19  ;;  %v81_v26 = vand.u32 2147483647, %v64_v19  ;;  %vm77_vm2 = vweird.f32 %v64_v19 }
 0x104   :  { %130 = vlog2.f32 %v64_v19 }
 0x105   :  { %v84_v30 = vor.u32 1.1754944e-38, %v83_v24  ;;  %vm82_vm4 = vcmp.eq.f32.partialorder %v81_v26, 8.507059e+37  ;;  %v71_v35 = vpop.xlane.xlu2 %70 }
 0x109   :  { %v129_v20 = vpop.eup %128 }
 0x10a   :  { %v73_v21 = vmul.f32 %v129_v20, %v64_v19  ;;  %v53_v22 = vpop.xlane.xlu1 %52  ;;  %vm78_vm1 = vweird.f32 %v129_v20  ;;  %v131_v27 = vpop.eup %130 }
 0x10b   :  { %132 = vlog2.f32 %v53_v22  ;;  %vm79_vm3 = vmor %vm77_vm2, %vm78_vm1  ;;  %v66_v32 = vmul.f32 0.6931472, %v131_v27 }
 0x10c   :  { %v74_v23 = vsub.f32 1.0, %v73_v21 }
 0x10e   :  { %v75_v25 = vmul.f32 %v129_v20, %v74_v23 }
 0x110   :  { %v76_v28 = vadd.f32 %v129_v20, %v75_v25 }
 0x111   :  { %v133_v29 = vpop.eup %132 }
 0x112   :  { %v80_v31 = vsel %vm79_vm3, %v129_v20, %v76_v28  ;;  %v55_v33 = vmul.f32 0.6931472, %v133_v29 }
 0x113   :  { %v85_v34 = vsel %vm82_vm4, %v84_v30, %v80_v31 }
 0x114   :  { %v86_v36 = vmul.f32 %v85_v34, %v71_v35  ;;  %v87_v37 = vsub.f32 %v55_v33, %v66_v32 }
 0x116   :  { %v88_v38 = vadd.f32 %v87_v37, %v86_v36 }
 0x118   :  { %v96_v39 = vrot.slane %v88_v38, 4 }
 0x11a   :  { %v97_v40 = vadd.f32 %v96_v39, %v88_v38 }
 0x11c   :  { %v98_v41 = vrot.slane %v97_v40, 2 }
 0x11e   :  { %v99_v42 = vadd.f32 %v98_v41, %v97_v40 }
 0x120   :  { %v100_v43 = vrot.slane %v99_v42, 1 }
 0x122   :  { %v101_v44 = vadd.f32 %v100_v43, %v99_v42 }
 0x124   :  { %102 = vst [vmem:[#allocation7] sm:$0x1] %v101_v44 }
 0x125   :  { %113 = dma.vmem_to_hbm [thread:$0]  %s109_s1, 16, %s111_s21, [#allocation4]  }
 0x126   :  { %210 = dma.done.wait [#allocation4], 16  }
 0x127   :  { %211 = vsyncadd [#allocation4], 4294967280 }
 0x128   :  { %118 = vsyncpa [#allocation3], 1 }
 0x129   :  { %119 = vsyncpa [#allocation6], 1 }
 0x12a   :  { %120 = vsyncpa [#allocation4], 1 }

</bundles_post_ra>
